<compile_context>
chip_gen: v6e
topology: v6e:2x2x1
jax: 0.10.0
libtpu: 0.0.40
codegen_flags: <defaults>
</compile_context>

<pallas_src>
import functools

import jax
import jax.numpy as jnp
from jax.experimental import pallas as pl
from jax.experimental.pallas import tpu as pltpu

_EPS = 1e-5


def _projector_kernel(x_ref,
                      w1_ref, b1_ref, g1_ref, bt1_ref,
                      w2_ref, b2_ref, g2_ref, bt2_ref,
                      w3_ref, b3_ref, g3_ref, bt3_ref,
                      o_ref, *, eps: float):
    """Fused: 3x (x @ W + b ; BN over batch axis ; folded affine ; optional ReLU)."""

    def layer(h, w_ref, b_ref, g_ref, beta_ref, relu):
        # MXU matmul: bf16 operands, f32 accumulation.
        y = jnp.dot(h.astype(jnp.bfloat16), w_ref[...],
                    preferred_element_type=jnp.float32) + b_ref[...]
        # BatchNorm1d (training mode): stats over batch dim (axis 0), biased var.
        mean = jnp.mean(y, axis=0, keepdims=True)
        centered = y - mean
        var = jnp.mean(centered * centered, axis=0, keepdims=True)
        # Fold gamma/beta into per-feature scale/shift (rsqrt -> EUP slot).
        scale = g_ref[...] * jax.lax.rsqrt(var + eps)
        shift = beta_ref[...] - mean * scale
        out = y * scale + shift
        if relu:
            out = jnp.maximum(out, 0.0)
        return out

    h = x_ref[...].astype(jnp.float32)
    h = layer(h, w1_ref, b1_ref, g1_ref, bt1_ref, True)    # layer1: Linear->BN->ReLU
    h = layer(h, w2_ref, b2_ref, g2_ref, bt2_ref, True)    # layer2: Linear->BN->ReLU
    h = layer(h, w3_ref, b3_ref, g3_ref, bt3_ref, False)   # layer3: Linear->BN
    o_ref[...] = h.astype(o_ref.dtype)


def projector_forward(params, x, *, eps: float = _EPS):
    """x: [B, in_dim] f32.  params: list of 3 dicts with w (bf16, [din,dout]),
    b/gamma/beta (f32, [dout])."""
    B = x.shape[0]
    out_dim = params[2]["w"].shape[1]

    vmem = lambda: pl.BlockSpec(memory_space=pltpu.MemorySpace.VMEM)

    flat_args = [x]
    in_specs = [vmem()]
    flops = 0
    bytes_accessed = x.size * x.dtype.itemsize
    transcendentals = 0
    for p in params:
        din, dout = p["w"].shape
        flat_args += [p["w"],
                      p["b"].reshape(1, dout),
                      p["gamma"].reshape(1, dout),
                      p["beta"].reshape(1, dout)]
        in_specs += [vmem(), vmem(), vmem(), vmem()]
        flops += 2 * B * din * dout + 8 * B * dout        # matmul + BN elementwise
        transcendentals += dout                           # one rsqrt per feature
        bytes_accessed += p["w"].size * p["w"].dtype.itemsize + 3 * dout * 4
    bytes_accessed += B * out_dim * 4

    kernel = functools.partial(_projector_kernel, eps=eps)
    return pl.pallas_call(
        kernel,
        out_shape=jax.ShapeDtypeStruct((B, out_dim), jnp.float32),
        in_specs=in_specs,
        out_specs=vmem(),
        compiler_params=pltpu.CompilerParams(vmem_limit_bytes=64 << 20),
        cost_estimate=pl.CostEstimate(flops=flops,
                                      transcendentals=transcendentals,
                                      bytes_accessed=bytes_accessed),
    )(*flat_args)


def init_projector_params(key, in_dim, hidden_dim, out_dim):
    """Deterministic synthetic params mirroring the PyTorch module's shapes.
    Weights are stored bf16 (MXU operand dtype); bias/BN params stay f32."""
    dims = [(in_dim, hidden_dim), (hidden_dim, hidden_dim), (hidden_dim, out_dim)]
    params = []
    for din, dout in dims:
        key, kw, kb = jax.random.split(key, 3)
        bound = 1.0 / jnp.sqrt(float(din))
        w = jax.random.uniform(kw, (din, dout), jnp.float32, -bound, bound)
        b = jax.random.uniform(kb, (dout,), jnp.float32, -bound, bound)
        params.append(dict(
            w=w.astype(jnp.bfloat16),
            b=b,
            gamma=jnp.ones((dout,), jnp.float32),   # BN weight init
            beta=jnp.zeros((dout,), jnp.float32),   # BN bias init
        ))
    return params


def _reference_mirror(params, x, eps=_EPS):
    """Pure-JAX reference with the SAME numerics as the kernel (bf16 matmul,
    f32 accumulation + BN).  Used for a tight correctness check."""
    h = x.astype(jnp.float32)
    for i, p in enumerate(params):
        y = jnp.dot(h.astype(jnp.bfloat16), p["w"],
                    preferred_element_type=jnp.float32) + p["b"][None, :]
        mean = jnp.mean(y, axis=0, keepdims=True)
        var = jnp.mean((y - mean) ** 2, axis=0, keepdims=True)
        scale = p["gamma"][None, :] * jax.lax.rsqrt(var + eps)
        y = y * scale + (p["beta"][None, :] - mean * scale)
        if i < 2:
            y = jnp.maximum(y, 0.0)
        h = y
    return h


def _reference_f32(params, x, eps=_EPS):
    """Full-f32 reference (PyTorch semantics); looser tolerance vs bf16 matmuls."""
    h = x
    for i, p in enumerate(params):
        y = h @ p["w"].astype(jnp.float32) + p["b"][None, :]
        mean = jnp.mean(y, axis=0, keepdims=True)
        var = jnp.mean((y - mean) ** 2, axis=0, keepdims=True)
        y = p["gamma"][None, :] * (y - mean) * jax.lax.rsqrt(var + eps) + p["beta"][None, :]
        if i < 2:
            y = jnp.maximum(y, 0.0)
        h = y
    return h


if __name__ == "__main__":
    # Small shapes consistent with the module: batch=16 (multiple of 8, e.g. the
    # two SimSiam views concatenated), in_dim=64, hidden=out=128.
    B, IN_DIM, HIDDEN, OUT = 16, 64, 128, 128

    key = jax.random.PRNGKey(0)
    key, kx = jax.random.split(key)
    x = jax.random.normal(kx, (B, IN_DIM), dtype=jnp.float32)

    params = init_projector_params(key, IN_DIM, HIDDEN, OUT)

    out = projector_forward(params, x)
    out = jax.block_until_ready(out)
    assert out.shape == (B, OUT)

    # Tight check against a reference with identical numerics (bf16 matmul).
    ref_mirror = _reference_mirror(params, x)
    assert jnp.allclose(out, ref_mirror, atol=2e-3, rtol=2e-3), "mismatch vs bf16 mirror reference"

    # Looser check against the full-f32 PyTorch-semantics reference.
    ref_f32 = _reference_f32(params, x)
    assert jnp.allclose(out, ref_f32, atol=2e-1, rtol=2e-1), "mismatch vs f32 reference"

    print("KERNEL_OK")
</pallas_src>

<mosaic_0001>
module attributes {stable_mosaic.version = 11 : i64} {
  func.func @_projector_kernel(%arg0: memref<16x64xf32, #tpu.memory_space<vmem>>, %arg1: memref<64x128xbf16, #tpu.memory_space<vmem>>, %arg2: memref<1x128xf32, #tpu.memory_space<vmem>>, %arg3: memref<1x128xf32, #tpu.memory_space<vmem>>, %arg4: memref<1x128xf32, #tpu.memory_space<vmem>>, %arg5: memref<128x128xbf16, #tpu.memory_space<vmem>>, %arg6: memref<1x128xf32, #tpu.memory_space<vmem>>, %arg7: memref<1x128xf32, #tpu.memory_space<vmem>>, %arg8: memref<1x128xf32, #tpu.memory_space<vmem>>, %arg9: memref<128x128xbf16, #tpu.memory_space<vmem>>, %arg10: memref<1x128xf32, #tpu.memory_space<vmem>>, %arg11: memref<1x128xf32, #tpu.memory_space<vmem>>, %arg12: memref<1x128xf32, #tpu.memory_space<vmem>>, %arg13: memref<16x128xf32, #tpu.memory_space<vmem>>) attributes {dimension_semantics = [], scalar_prefetch = 0 : i64, scratch_operands = 0 : i64, tpu.core_type = #tpu.core_type<tc>} {
    %c0 = arith.constant 0 : index
    %c0_0 = arith.constant 0 : index
    %0 = vector.load %arg0[%c0, %c0_0] : memref<16x64xf32, #tpu.memory_space<vmem>>, vector<16x64xf32>
    %1 = arith.truncf %0 : vector<16x64xf32> to vector<16x64xbf16>
    %c0_1 = arith.constant 0 : index
    %c0_2 = arith.constant 0 : index
    %2 = vector.load %arg1[%c0_1, %c0_2] : memref<64x128xbf16, #tpu.memory_space<vmem>>, vector<64x128xbf16>
    %cst = arith.constant dense<0.000000e+00> : vector<16x128xf32>
    %3 = tpu.matmul %1, %2, %cst {dimension_numbers = #tpu.dot_dimension_numbers<[1], [0], [0], [1], [0, 0, 1, 1], [], []>} : vector<16x64xbf16>, vector<64x128xbf16>, vector<16x128xf32> -> vector<16x128xf32>
    %c0_3 = arith.constant 0 : index
    %c0_4 = arith.constant 0 : index
    %4 = vector.load %arg2[%c0_3, %c0_4] : memref<1x128xf32, #tpu.memory_space<vmem>>, vector<1x128xf32>
    %5 = vector.broadcast %4 : vector<1x128xf32> to vector<16x128xf32>
    %6 = arith.addf %3, %5 : vector<16x128xf32>
    %cst_5 = arith.constant dense<0.000000e+00> : vector<128xf32>
    %7 = vector.multi_reduction <add>, %6, %cst_5 [0] : vector<16x128xf32> to vector<128xf32>
    %8 = vector.shape_cast %7 : vector<128xf32> to vector<1x128xf32>
    %cst_6 = arith.constant 1.600000e+01 : f32
    %9 = vector.broadcast %cst_6 : f32 to vector<1x128xf32>
    %10 = arith.divf %8, %9 : vector<1x128xf32>
    %11 = vector.broadcast %10 : vector<1x128xf32> to vector<16x128xf32>
    %12 = arith.subf %6, %11 : vector<16x128xf32>
    %13 = arith.mulf %12, %12 : vector<16x128xf32>
    %cst_7 = arith.constant dense<0.000000e+00> : vector<128xf32>
    %14 = vector.multi_reduction <add>, %13, %cst_7 [0] : vector<16x128xf32> to vector<128xf32>
    %15 = vector.shape_cast %14 : vector<128xf32> to vector<1x128xf32>
    %cst_8 = arith.constant 1.600000e+01 : f32
    %16 = vector.broadcast %cst_8 : f32 to vector<1x128xf32>
    %17 = arith.divf %15, %16 : vector<1x128xf32>
    %c0_9 = arith.constant 0 : index
    %c0_10 = arith.constant 0 : index
    %18 = vector.load %arg3[%c0_9, %c0_10] : memref<1x128xf32, #tpu.memory_space<vmem>>, vector<1x128xf32>
    %cst_11 = arith.constant 9.99999974E-6 : f32
    %19 = vector.broadcast %cst_11 : f32 to vector<1x128xf32>
    %20 = arith.addf %17, %19 : vector<1x128xf32>
    %21 = math.rsqrt %20 : vector<1x128xf32>
    %22 = arith.mulf %18, %21 : vector<1x128xf32>
    %c0_12 = arith.constant 0 : index
    %c0_13 = arith.constant 0 : index
    %23 = vector.load %arg4[%c0_12, %c0_13] : memref<1x128xf32, #tpu.memory_space<vmem>>, vector<1x128xf32>
    %24 = arith.mulf %10, %22 : vector<1x128xf32>
    %25 = arith.subf %23, %24 : vector<1x128xf32>
    %26 = vector.broadcast %22 : vector<1x128xf32> to vector<16x128xf32>
    %27 = arith.mulf %6, %26 : vector<16x128xf32>
    %28 = vector.broadcast %25 : vector<1x128xf32> to vector<16x128xf32>
    %29 = arith.addf %27, %28 : vector<16x128xf32>
    %cst_14 = arith.constant 0.000000e+00 : f32
    %30 = vector.broadcast %cst_14 : f32 to vector<16x128xf32>
    %31 = arith.maximumf %29, %30 : vector<16x128xf32>
    %32 = arith.truncf %31 : vector<16x128xf32> to vector<16x128xbf16>
    %c0_15 = arith.constant 0 : index
    %c0_16 = arith.constant 0 : index
    %33 = vector.load %arg5[%c0_15, %c0_16] : memref<128x128xbf16, #tpu.memory_space<vmem>>, vector<128x128xbf16>
    %cst_17 = arith.constant dense<0.000000e+00> : vector<16x128xf32>
    %34 = tpu.matmul %32, %33, %cst_17 {dimension_numbers = #tpu.dot_dimension_numbers<[1], [0], [0], [1], [0, 0, 1, 1], [], []>} : vector<16x128xbf16>, vector<128x128xbf16>, vector<16x128xf32> -> vector<16x128xf32>
    %c0_18 = arith.constant 0 : index
    %c0_19 = arith.constant 0 : index
    %35 = vector.load %arg6[%c0_18, %c0_19] : memref<1x128xf32, #tpu.memory_space<vmem>>, vector<1x128xf32>
    %36 = vector.broadcast %35 : vector<1x128xf32> to vector<16x128xf32>
    %37 = arith.addf %34, %36 : vector<16x128xf32>
    %cst_20 = arith.constant dense<0.000000e+00> : vector<128xf32>
    %38 = vector.multi_reduction <add>, %37, %cst_20 [0] : vector<16x128xf32> to vector<128xf32>
    %39 = vector.shape_cast %38 : vector<128xf32> to vector<1x128xf32>
    %cst_21 = arith.constant 1.600000e+01 : f32
    %40 = vector.broadcast %cst_21 : f32 to vector<1x128xf32>
    %41 = arith.divf %39, %40 : vector<1x128xf32>
    %42 = vector.broadcast %41 : vector<1x128xf32> to vector<16x128xf32>
    %43 = arith.subf %37, %42 : vector<16x128xf32>
    %44 = arith.mulf %43, %43 : vector<16x128xf32>
    %cst_22 = arith.constant dense<0.000000e+00> : vector<128xf32>
    %45 = vector.multi_reduction <add>, %44, %cst_22 [0] : vector<16x128xf32> to vector<128xf32>
    %46 = vector.shape_cast %45 : vector<128xf32> to vector<1x128xf32>
    %cst_23 = arith.constant 1.600000e+01 : f32
    %47 = vector.broadcast %cst_23 : f32 to vector<1x128xf32>
    %48 = arith.divf %46, %47 : vector<1x128xf32>
    %c0_24 = arith.constant 0 : index
    %c0_25 = arith.constant 0 : index
    %49 = vector.load %arg7[%c0_24, %c0_25] : memref<1x128xf32, #tpu.memory_space<vmem>>, vector<1x128xf32>
    %cst_26 = arith.constant 9.99999974E-6 : f32
    %50 = vector.broadcast %cst_26 : f32 to vector<1x128xf32>
    %51 = arith.addf %48, %50 : vector<1x128xf32>
    %52 = math.rsqrt %51 : vector<1x128xf32>
    %53 = arith.mulf %49, %52 : vector<1x128xf32>
    %c0_27 = arith.constant 0 : index
    %c0_28 = arith.constant 0 : index
    %54 = vector.load %arg8[%c0_27, %c0_28] : memref<1x128xf32, #tpu.memory_space<vmem>>, vector<1x128xf32>
    %55 = arith.mulf %41, %53 : vector<1x128xf32>
    %56 = arith.subf %54, %55 : vector<1x128xf32>
    %57 = vector.broadcast %53 : vector<1x128xf32> to vector<16x128xf32>
    %58 = arith.mulf %37, %57 : vector<16x128xf32>
    %59 = vector.broadcast %56 : vector<1x128xf32> to vector<16x128xf32>
    %60 = arith.addf %58, %59 : vector<16x128xf32>
    %cst_29 = arith.constant 0.000000e+00 : f32
    %61 = vector.broadcast %cst_29 : f32 to vector<16x128xf32>
    %62 = arith.maximumf %60, %61 : vector<16x128xf32>
    %63 = arith.truncf %62 : vector<16x128xf32> to vector<16x128xbf16>
    %c0_30 = arith.constant 0 : index
    %c0_31 = arith.constant 0 : index
    %64 = vector.load %arg9[%c0_30, %c0_31] : memref<128x128xbf16, #tpu.memory_space<vmem>>, vector<128x128xbf16>
    %cst_32 = arith.constant dense<0.000000e+00> : vector<16x128xf32>
    %65 = tpu.matmul %63, %64, %cst_32 {dimension_numbers = #tpu.dot_dimension_numbers<[1], [0], [0], [1], [0, 0, 1, 1], [], []>} : vector<16x128xbf16>, vector<128x128xbf16>, vector<16x128xf32> -> vector<16x128xf32>
    %c0_33 = arith.constant 0 : index
    %c0_34 = arith.constant 0 : index
    %66 = vector.load %arg10[%c0_33, %c0_34] : memref<1x128xf32, #tpu.memory_space<vmem>>, vector<1x128xf32>
    %67 = vector.broadcast %66 : vector<1x128xf32> to vector<16x128xf32>
    %68 = arith.addf %65, %67 : vector<16x128xf32>
    %cst_35 = arith.constant dense<0.000000e+00> : vector<128xf32>
    %69 = vector.multi_reduction <add>, %68, %cst_35 [0] : vector<16x128xf32> to vector<128xf32>
    %70 = vector.shape_cast %69 : vector<128xf32> to vector<1x128xf32>
    %cst_36 = arith.constant 1.600000e+01 : f32
    %71 = vector.broadcast %cst_36 : f32 to vector<1x128xf32>
    %72 = arith.divf %70, %71 : vector<1x128xf32>
    %73 = vector.broadcast %72 : vector<1x128xf32> to vector<16x128xf32>
    %74 = arith.subf %68, %73 : vector<16x128xf32>
    %75 = arith.mulf %74, %74 : vector<16x128xf32>
    %cst_37 = arith.constant dense<0.000000e+00> : vector<128xf32>
    %76 = vector.multi_reduction <add>, %75, %cst_37 [0] : vector<16x128xf32> to vector<128xf32>
    %77 = vector.shape_cast %76 : vector<128xf32> to vector<1x128xf32>
    %cst_38 = arith.constant 1.600000e+01 : f32
    %78 = vector.broadcast %cst_38 : f32 to vector<1x128xf32>
    %79 = arith.divf %77, %78 : vector<1x128xf32>
    %c0_39 = arith.constant 0 : index
    %c0_40 = arith.constant 0 : index
    %80 = vector.load %arg11[%c0_39, %c0_40] : memref<1x128xf32, #tpu.memory_space<vmem>>, vector<1x128xf32>
    %cst_41 = arith.constant 9.99999974E-6 : f32
    %81 = vector.broadcast %cst_41 : f32 to vector<1x128xf32>
    %82 = arith.addf %79, %81 : vector<1x128xf32>
    %83 = math.rsqrt %82 : vector<1x128xf32>
    %84 = arith.mulf %80, %83 : vector<1x128xf32>
    %c0_42 = arith.constant 0 : index
    %c0_43 = arith.constant 0 : index
    %85 = vector.load %arg12[%c0_42, %c0_43] : memref<1x128xf32, #tpu.memory_space<vmem>>, vector<1x128xf32>
    %86 = arith.mulf %72, %84 : vector<1x128xf32>
    %87 = arith.subf %85, %86 : vector<1x128xf32>
    %88 = vector.broadcast %84 : vector<1x128xf32> to vector<16x128xf32>
    %89 = arith.mulf %68, %88 : vector<16x128xf32>
    %90 = vector.broadcast %87 : vector<1x128xf32> to vector<16x128xf32>
    %91 = arith.addf %89, %90 : vector<16x128xf32>
    %c0_44 = arith.constant 0 : index
    %c0_45 = arith.constant 0 : index
    %92 = vector.load %arg13[%c0_44, %c0_45] : memref<16x128xf32, #tpu.memory_space<vmem>>, vector<16x128xf32>
    tpu.vector_store %arg13[%c0_44, %c0_45], %91 {strides = array<i32>} : memref<16x128xf32, #tpu.memory_space<vmem>>, vector<16x128xf32>,
    return
  }
}

</mosaic_0001>

<bundles_post_ra>
// kernel: tpu_custom_call.1
= control target key start
LH: loop header
LB: loop body
LE: loop exit
PB: predicated region body
PF: predicated region fallthrough
CT: control target
= control target key end

     0   :  { %18 = vsyncpa [#allocation3], 0  ;;  %s985_s0 = inlined_call_operand.hbm [shape: f32[16,64], index: 0, kind: input, shape index: {}]   ;;  %s986_s1 = inlined_call_operand.hbm [shape: bf16[64,128], index: 1, kind: input, shape index: {}]   ;;  %s987_s2 = inlined_call_operand.vmem [shape: f32[1,128], index: 2, kind: input, shape index: {}]   ;;  %s988_s3 = inlined_call_operand.vmem [shape: f32[1,128], index: 3, kind: input, shape index: {}]   ;;  %s989_s4 = inlined_call_operand.vmem [shape: f32[1,128], index: 4, kind: input, shape index: {}]   ;;  %s990_s5 = inlined_call_operand.hbm [shape: bf16[128,128], index: 5, kind: input, shape index: {}]   ;;  %s991_s6 = inlined_call_operand.vmem [shape: f32[1,128], index: 6, kind: input, shape index: {}]   ;;  %s992_s7 = inlined_call_operand.vmem [shape: f32[1,128], index: 7, kind: input, shape index: {}]   ;;  %s993_s8 = inlined_call_operand.vmem [shape: f32[1,128], index: 8, kind: input, shape index: {}]   ;;  %s994_s9 = inlined_call_operand.hbm [shape: bf16[128,128], index: 9, kind: input, shape index: {}]   ;;  %s995_s10 = inlined_call_operand.vmem [shape: f32[1,128], index: 10, kind: input, shape index: {}]   ;;  %s996_s11 = inlined_call_operand.vmem [shape: f32[1,128], index: 11, kind: input, shape index: {}]   ;;  %s997_s12 = inlined_call_operand.vmem [shape: f32[1,128], index: 12, kind: input, shape index: {}]   ;;  %s998_s13 = inlined_call_operand.hbm [shape: f32[16,128], index: 13, kind: output, shape index: {}]  }
   0x1   :  { %19 = vsyncpa [#allocation6], 0 }
   0x2   :  { %20 = vsyncpa [#allocation9], 0 }
   0x3   :  { %21 = vsyncpa [#allocation4], 0  ;;  %s813_s25 = smov [#allocation5]  }
   0x4   :  { %s39_s26 = sshll.u32 %s813_s25, 4  ;;  %s40_s26 = int_to_ptr.vmem [resolvable:$true] %s39_s26 }
   0x5   :  { %s713_s27 = scalar_lea.vmem %s40_s26, 512  ;;  %p718_p1 = scmp.lt.s32.totalorder %s40_s26, %s40_s26 }
   0x6   :  { %p714_p0 = scmp.ne.s32.totalorder %s40_s26, %s713_s27  ;;  %p719_p2 = scmp.lt.s32.totalorder %s713_s27, %s713_s27 }
   0x8   :  { %p720_p3 = por %p719_p2, %p718_p1 }
   0xa   :  { %p721_p4 = pnand %p720_p3, %p714_p0 }
   0xc   :  { %724 = shalt.err (!%p721_p4)
}
   0xd   :  { %s814_s28 = smov 64   ;;  %s815_s29 = smov 4  }
   0xe   :  { %45 = dma.hbm_to_vmem [thread:$0]  %s986_s1, 512, %s40_s26, [#allocation6], %s814_s28, %s814_s28, %s815_s29  }
   0xf   :  { %s816_s15 = smov [#allocation2]  }
  0x10   :  { %s27_s16 = sshll.u32 %s816_s15, 4  ;;  %s28_s16 = int_to_ptr.vmem [resolvable:$true] %s27_s16 }
  0x11   :  { %s733_s17 = scalar_lea.vmem %s28_s16, 256  ;;  %p738_p6 = scmp.lt.s32.totalorder %s28_s16, %s28_s16 }
  0x12   :  { %p734_p5 = scmp.ne.s32.totalorder %s28_s16, %s733_s17  ;;  %p739_p7 = scmp.lt.s32.totalorder %s733_s17, %s733_s17 }
  0x14   :  { %p740_p8 = por %p739_p7, %p738_p6 }
  0x16   :  { %p741_p9 = pnand %p740_p8, %p734_p5 }
  0x18   :  { %744 = shalt.err (!%p741_p9)
}
  0x19   :  { %s817_s18 = smov 128   ;;  %s818_s19 = smov 8  }
  0x1a   :  { %33 = dma.hbm_to_vmem [thread:$0]  %s985_s0, 256, %s28_s16, [#allocation3], %s817_s18, %s817_s18, %s818_s19  }
  0x1b   :  { %s819_s1 = smov [#allocation7]   ;;  %s820_s23 = smov [#allocation8]  }
  0x1c   :  { %s57_s22 = sshll.u32 %s819_s1, 4  ;;  %s75_s24 = sshll.u32 %s820_s23, 4  ;;  %s58_s22 = int_to_ptr.vmem [resolvable:$true] %s57_s22  ;;  %s76_s24 = int_to_ptr.vmem [resolvable:$true] %s75_s24 }
  0x1d   :  { %s753_s25 = scalar_lea.vmem %s58_s22, 1024  ;;  %p758_p11 = scmp.lt.s32.totalorder %s58_s22, %s58_s22 }
  0x1e   :  { %p754_p10 = scmp.ne.s32.totalorder %s58_s22, %s753_s25  ;;  %p759_p12 = scmp.lt.s32.totalorder %s753_s25, %s753_s25 }
  0x20   :  { %p760_p13 = por %p759_p12, %p758_p11 }
  0x22   :  { %p761_p0 = pnand %p760_p13, %p754_p10 }
  0x24   :  { %764 = shalt.err (!%p761_p0)
}
  0x25   :  { %63 = dma.hbm_to_vmem [thread:$0]  %s990_s5, 1024, %s58_s22, [#allocation6], %s814_s28, %s814_s28, %s815_s29  }
  0x26   :  { %s773_s0 = scalar_lea.vmem %s76_s24, 1024  ;;  %p778_p2 = scmp.lt.s32.totalorder %s76_s24, %s76_s24 }
  0x27   :  { %p774_p1 = scmp.ne.s32.totalorder %s76_s24, %s773_s0  ;;  %p779_p3 = scmp.lt.s32.totalorder %s773_s0, %s773_s0 }
  0x29   :  { %p780_p4 = por %p779_p3, %p778_p2 }
  0x2b   :  { %p781_p5 = pnand %p780_p4, %p774_p1 }
  0x2d   :  { %784 = shalt.err (!%p781_p5)
}
  0x2e   :  { %81 = dma.hbm_to_vmem [thread:$0]  %s994_s9, 1024, %s76_s24, [#allocation9], %s814_s28, %s814_s28, %s815_s29  }
  0x2f   :  { %805 = dma.done.wait [#allocation3], 256  }
  0x30   :  { %806 = vsyncadd [#allocation3], 4294967040 }
  0x31   :  { %807 = dma.done.wait [#allocation6], 1536  }
  0x32   :  { %808 = vsyncadd [#allocation6], 4294965760 }
  0x33   :  { %809 = dma.done.wait [#allocation9], 1024  }
  0x34   :  { %810 = vsyncadd [#allocation9], 4294966272  ;;  %v821_v0 = vmov 0.0   ;;  %vm822_vm0 = vmmov 0   ;;  %v679_v1 = vld [vmem:[#allocation5 + $0x18] sm:$0xff]   ;;  %v680_v2 = vld [vmem:[#allocation5 + $0x10] sm:$0xff]   ;;  %v217_v44 = vlaneseq }
  0x35   :  { %616 = vmatprep.subr.bf16.mxu0 %v821_v0  ;;  %624 = vmatprep.mubr.msk.bf16.mxu0 %vm822_vm0, %v821_v0  ;;  %v681_v3 = vld [vmem:[#allocation5 + $0x8] sm:$0xff]   ;;  %vm143_vm1 = vcmask 523264   ;;  %v682_v4 = vld [vmem:[#allocation5] sm:$0xff]   ;;  %v101_v5 = vld [vmem:[#allocation2] sm:$0xff]  ;;  %s823_s23 = smov [#allocation10]  }
  0x36   :  { %628 = vmatprep.subr.bf16.mxu1 %v821_v0  ;;  %644 = vmatprep.mubr.msk.bf16.mxu1 %vm822_vm0, %v821_v0  ;;  %v102_v6 = vld [vmem:[#allocation2 + $0x8] sm:$0xff]  ;;  %v684_v9 = vld [vmem:[#allocation7 + $0x30] sm:$0xff]   ;;  %v685_v10 = vld [vmem:[#allocation7 + $0x28] sm:$0xff]   ;;  %v218_v45 = vshrl.u32 %v217_v44, 7  ;;  %s555_s24 = sshll.u32 %s823_s23, 4  ;;  %s556_s24 = int_to_ptr.vmem [resolvable:$true] %s555_s24 }
  0x37   :  { %617 = vmatpush3.bf16.msra.mxu0 %v679_v1  ;;  %v103_v7 = vpack.c.bf16 %v102_v6, %v101_v5  ;;  %v683_v8 = vld [vmem:[#allocation7 + $0x38] sm:$0xff]   ;;  %v686_v11 = vld [vmem:[#allocation7 + $0x20] sm:$0xff]   ;;  %v688_v13 = vld [vmem:[#allocation7 + $0x10] sm:$0xff]   ;;  %p790_p7 = scmp.lt.s32.totalorder %s556_s24, %s556_s24 }
  0x38   :  { %618 = vmatprep.subr.bf16.mxu0 %v821_v0  ;;  %629 = vmatpush3.bf16.msra.mxu1 %v683_v8  ;;  %v687_v12 = vld [vmem:[#allocation7 + $0x18] sm:$0xff]   ;;  %v689_v14 = vld [vmem:[#allocation7 + $0x8] sm:$0xff]   ;;  %v690_v15 = vld [vmem:[#allocation7] sm:$0xff]   ;;  %v943_v47 = vsub.s32 0, %v218_v45 }
  0x39   :  { %630 = vmatprep.subr.bf16.mxu1 %v821_v0  ;;  %v569_v17 = vld [vmem:[%s987_s2] ss:$0 sm:$0xff]  ;;  %v691_v62 = vld [vmem:[#allocation8 + $0x38] sm:$0xff]   ;;  %v693_v1 = vld [vmem:[#allocation8 + $0x28] sm:$0xff]  }
  0x3a   :  { %v209_v46 = vld [vmem:[%s988_s3] sm:$0x1]  ;;  %v697_v5 = vld [vmem:[#allocation8 + $0x8] sm:$0xff]   ;;  %v698_v6 = vld [vmem:[#allocation8] sm:$0xff]  }
  0x3b   :  { %619 = vmatpush3.bf16.msra.mxu0 %v680_v2  ;;  %v213_v50 = vld [vmem:[%s989_s4] sm:$0x1]  ;;  %v694_v2 = vld [vmem:[#allocation8 + $0x20] sm:$0xff]  }
  0x3c   :  { %620 = vmatprep.subr.bf16.mxu0 %v821_v0  ;;  %631 = vmatpush3.bf16.msra.mxu1 %v684_v9  ;;  %v692_v63 = vld [vmem:[#allocation8 + $0x30] sm:$0xff]  }
  0x3d   :  { %632 = vmatprep.subr.bf16.mxu1 %v821_v0  ;;  %v575_v8 = vld [vmem:[%s991_s6] ss:$0 sm:$0xff] }
  0x3f   :  { %621 = vmatpush3.bf16.msra.mxu0 %v681_v3  ;;  %v695_v3 = vld [vmem:[#allocation8 + $0x18] sm:$0xff]  }
  0x40   :  { %622 = vmatprep.subr.bf16.mxu0 %v821_v0  ;;  %633 = vmatpush3.bf16.msra.mxu1 %v685_v10 }
  0x41   :  { %634 = vmatprep.subr.bf16.mxu1 %v821_v0 }
  0x43   :  { %623 = vmatpush3.bf16.msra.mxu0 %v682_v4  ;;  %v696_v4 = vld [vmem:[#allocation8 + $0x10] sm:$0xff]  }
  0x44   :  { %648 = vmatprep.subr.bf16.mxu0 %v821_v0  ;;  %635 = vmatpush3.bf16.msra.mxu1 %v686_v11 }
  0x45   :  { %636 = vmatprep.subr.bf16.mxu1 %v821_v0 }
  0x46   :  { %625 = vmatmul.mubr.msk.bf16.vlgmr.msra.gmra.mxu0 %vm143_vm1, %v103_v7 }
  0x47   :  { %664 = vmatprep.mubr.msk.bf16.mxu0 %vm822_vm0, %v821_v0  ;;  %649 = vmatpush3.bf16.msra.mxu0 %v691_v62 }
  0x48   :  { %637 = vmatpush3.bf16.msra.mxu1 %v687_v12  ;;  %650 = vmatprep.subr.bf16.mxu0 %v821_v0 }
  0x49   :  { %638 = vmatprep.subr.bf16.mxu1 %v821_v0 }
  0x4b   :  { %651 = vmatpush3.bf16.msra.mxu0 %v692_v63 }
  0x4c   :  { %639 = vmatpush3.bf16.msra.mxu1 %v688_v13  ;;  %652 = vmatprep.subr.bf16.mxu0 %v821_v0 }
  0x4d   :  { %640 = vmatprep.subr.bf16.mxu1 %v821_v0 }
  0x4f   :  { %653 = vmatpush3.bf16.msra.mxu0 %v693_v1 }
  0x50   :  { %641 = vmatpush3.bf16.msra.mxu1 %v689_v14  ;;  %654 = vmatprep.subr.bf16.mxu0 %v821_v0 }
  0x51   :  { %642 = vmatprep.subr.bf16.mxu1 %v821_v0 }
  0x53   :  { %655 = vmatpush3.bf16.msra.mxu0 %v694_v2 }
  0x54   :  { %643 = vmatpush3.bf16.msra.mxu1 %v690_v15  ;;  %656 = vmatprep.subr.bf16.mxu0 %v821_v0 }
  0x57   :  { %657 = vmatpush3.bf16.msra.mxu0 %v695_v3 }
  0x58   :  { %658 = vmatprep.subr.bf16.mxu0 %v821_v0 }
  0x5b   :  { %659 = vmatpush3.bf16.msra.mxu0 %v696_v4 }
  0x5c   :  { %660 = vmatprep.subr.bf16.mxu0 %v821_v0 }
  0x5f   :  { %661 = vmatpush3.bf16.msra.mxu0 %v697_v5 }
  0x60   :  { %662 = vmatprep.subr.bf16.mxu0 %v821_v0 }
  0x63   :  { %663 = vmatpush3.bf16.msra.mxu0 %v698_v6 }
 0x106   :  { %v181_v16 = vpop.f32.mrf.mxu0 }
 0x107   :  { %v182_v20 = vadd.f32 %v569_v17, %v181_v16 }
 0x108   :  { %v626_v18 = vpop.f32.mrf.mxu0 }
 0x10a   :  { %v184_v19 = vpop.f32.mrf.mxu0 }
 0x10b   :  { %v185_v21 = vadd.f32 %v569_v17, %v184_v19 }
 0x10c   :  { %v627_v22 = vpop.f32.mrf.mxu0 }
 0x10d   :  { %v188_v23 = vadd.f32 %v185_v21, %v182_v20 }
 0x10f   :  { %v189_v24 = vrot.slane %v188_v23, 4 }
 0x111   :  { %v190_v25 = vadd.f32 %v189_v24, %v188_v23 }
 0x113   :  { %v191_v26 = vrot.slane %v190_v25, 2 }
 0x115   :  { %v192_v27 = vadd.f32 %v191_v26, %v190_v25 }
 0x117   :  { %v193_v28 = vrot.slane %v192_v27, 1 }
 0x119   :  { %v194_v29 = vadd.f32 %v193_v28, %v192_v27 }
 0x11b   :  { %v196_v30 = vmul.f32 0.0625, %v194_v29 }
 0x11d   :  { %v197_v31 = vsub.f32 %v182_v20, %v196_v30  ;;  %v198_v32 = vsub.f32 %v185_v21, %v196_v30 }
 0x11f   :  { %v199_v33 = vmul.f32 %v197_v31, %v197_v31  ;;  %v200_v34 = vmul.f32 %v198_v32, %v198_v32 }
 0x121   :  { %v201_v35 = vadd.f32 %v200_v34, %v199_v33  ;;  %v367_v34 = vld [vmem:[%s992_s7] sm:$0x1] }
 0x123   :  { %v202_v36 = vrot.slane %v201_v35, 4 }
 0x125   :  { %v203_v37 = vadd.f32 %v202_v36, %v201_v35 }
 0x127   :  { %v204_v38 = vrot.slane %v203_v37, 2 }
 0x129   :  { %v205_v39 = vadd.f32 %v204_v38, %v203_v37  ;;  %v371_v37 = vld [vmem:[%s993_s8] sm:$0x1] }
 0x12b   :  { %v206_v40 = vrot.slane %v205_v39, 1 }
 0x12d   :  { %v207_v41 = vadd.f32 %v206_v40, %v205_v39 }
 0x12f   :  { %v208_v42 = vmul.f32 0.0625, %v207_v41 }
 0x131   :  { %v210_v43 = vadd.f32 1e-05, %v208_v42 }
 0x133   :  { %699 = vrsqrt.f32 %v210_v43 }
 0x140   :  { %v700_v48 = vpop.eup %699 }
 0x141   :  { %v212_v49 = vmul.f32 %v700_v48, %v209_v46 }
 0x143   :  { %v214_v51 = vmul.f32 %v212_v49, %v196_v30  ;;  %v220_v52 = vrot.slane %v212_v49, %v943_v47 }
 0x145   :  { %v215_v53 = vsub.f32 %v213_v50, %v214_v51  ;;  %v223_v54 = vmul.f32 %v220_v52, %v185_v21  ;;  %v222_v55 = vmul.f32 %v220_v52, %v182_v20  ;;  %v584_v51 = vld [vmem:[%s995_s10] ss:$0 sm:$0xff] }
 0x147   :  { %v228_v56 = vrot.slane %v215_v53, %v943_v47 }
 0x149   :  { %v230_v57 = vadd.f32 %v228_v56, %v222_v55  ;;  %v231_v58 = vadd.f32 %v228_v56, %v223_v54 }
 0x14b   :  { %v232_v59 = vmax.f32 %v230_v57, 0.0  ;;  %v233_v60 = vmax.f32 %v231_v58, 0.0 }
 0x14d   :  { %v234_v61 = vpack.c.bf16 %v233_v60, %v232_v59 }
 0x14f   :  { %645 = vmatmul.mubr.bf16.vlgmr.msra.gmra.mxu1 %v234_v61 }
 0x20f   :  { %v340_v7 = vpop.f32.mrf.mxu1 }
 0x210   :  { %v341_v11 = vadd.f32 %v575_v8, %v340_v7 }
 0x211   :  { %v646_v9 = vpop.f32.mrf.mxu1 }
 0x213   :  { %v343_v10 = vpop.f32.mrf.mxu1 }
 0x214   :  { %v344_v12 = vadd.f32 %v575_v8, %v343_v10 }
 0x215   :  { %v647_v13 = vpop.f32.mrf.mxu1 }
 0x216   :  { %v347_v14 = vadd.f32 %v344_v12, %v341_v11 }
 0x218   :  { %v348_v15 = vrot.slane %v347_v14, 4 }
 0x21a   :  { %v349_v16 = vadd.f32 %v348_v15, %v347_v14  ;;  %v525_v15 = vld [vmem:[%s996_s11] sm:$0x1]  ;;  %s785_s11 = scalar_lea.vmem %s556_s24, 256 }
 0x21b   :  { %p786_p6 = scmp.ne.s32.totalorder %s556_s24, %s785_s11  ;;  %p791_p8 = scmp.lt.s32.totalorder %s785_s11, %s785_s11 }
 0x21c   :  { %v350_v17 = vrot.slane %v349_v16, 2 }
 0x21d   :  { %p792_p9 = por %p791_p8, %p790_p7 }
 0x21e   :  { %v351_v18 = vadd.f32 %v350_v17, %v349_v16 }
 0x21f   :  { %p793_p10 = pnand %p792_p9, %p786_p6 }
 0x220   :  { %v352_v19 = vrot.slane %v351_v18, 1 }
 0x222   :  { %v353_v20 = vadd.f32 %v352_v19, %v351_v18  ;;  %v529_v18 = vld [vmem:[%s997_s12] sm:$0x1] }
 0x224   :  { %v354_v0 = vmul.f32 0.0625, %v353_v20 }
 0x226   :  { %v355_v21 = vsub.f32 %v341_v11, %v354_v0  ;;  %v356_v22 = vsub.f32 %v344_v12, %v354_v0 }
 0x228   :  { %v357_v23 = vmul.f32 %v355_v21, %v355_v21  ;;  %v358_v24 = vmul.f32 %v356_v22, %v356_v22 }
 0x22a   :  { %v359_v25 = vadd.f32 %v358_v24, %v357_v23 }
 0x22c   :  { %v360_v26 = vrot.slane %v359_v25, 4 }
 0x22e   :  { %v361_v27 = vadd.f32 %v360_v26, %v359_v25 }
 0x230   :  { %v362_v28 = vrot.slane %v361_v27, 2 }
 0x232   :  { %v363_v29 = vadd.f32 %v362_v28, %v361_v27 }
 0x234   :  { %v364_v30 = vrot.slane %v363_v29, 1 }
 0x236   :  { %v365_v31 = vadd.f32 %v364_v30, %v363_v29 }
 0x238   :  { %v366_v32 = vmul.f32 0.0625, %v365_v31 }
 0x23a   :  { %v368_v33 = vadd.f32 1e-05, %v366_v32 }
 0x23c   :  { %701 = vrsqrt.f32 %v368_v33 }
 0x249   :  { %v702_v35 = vpop.eup %701 }
 0x24a   :  { %v370_v36 = vmul.f32 %v702_v35, %v367_v34 }
 0x24c   :  { %v372_v38 = vmul.f32 %v370_v36, %v354_v0  ;;  %v378_v39 = vrot.slane %v370_v36, %v943_v47 }
 0x24e   :  { %v373_v40 = vsub.f32 %v371_v37, %v372_v38  ;;  %v380_v41 = vmul.f32 %v378_v39, %v341_v11  ;;  %v381_v42 = vmul.f32 %v378_v39, %v344_v12 }
 0x250   :  { %v386_v43 = vrot.slane %v373_v40, %v943_v47 }
 0x252   :  { %v389_v44 = vadd.f32 %v386_v43, %v381_v42  ;;  %v388_v45 = vadd.f32 %v386_v43, %v380_v41 }
 0x254   :  { %v391_v46 = vmax.f32 %v389_v44, 0.0  ;;  %v390_v48 = vmax.f32 %v388_v45, 0.0 }
 0x256   :  { %v392_v49 = vpack.c.bf16 %v391_v46, %v390_v48 }
 0x258   :  { %665 = vmatmul.mubr.bf16.vlgmr.msra.gmra.mxu0 %v392_v49 }
 0x318   :  { %v498_v50 = vpop.f32.mrf.mxu0 }
 0x319   :  { %v499_v54 = vadd.f32 %v584_v51, %v498_v50 }
 0x31a   :  { %v666_v52 = vpop.f32.mrf.mxu0 }
 0x31c   :  { %v501_v53 = vpop.f32.mrf.mxu0 }
 0x31d   :  { %v502_v55 = vadd.f32 %v584_v51, %v501_v53 }
 0x31e   :  { %v667_v56 = vpop.f32.mrf.mxu0 }
 0x31f   :  { %v505_v57 = vadd.f32 %v502_v55, %v499_v54 }
 0x321   :  { %v506_v58 = vrot.slane %v505_v57, 4 }
 0x323   :  { %v507_v59 = vadd.f32 %v506_v58, %v505_v57 }
 0x325   :  { %v508_v60 = vrot.slane %v507_v59, 2 }
 0x327   :  { %v509_v61 = vadd.f32 %v508_v60, %v507_v59 }
 0x329   :  { %v510_v62 = vrot.slane %v509_v61, 1 }
 0x32b   :  { %v511_v63 = vadd.f32 %v510_v62, %v509_v61 }
 0x32d   :  { %v512_v1 = vmul.f32 0.0625, %v511_v63 }
 0x32f   :  { %v513_v2 = vsub.f32 %v499_v54, %v512_v1  ;;  %v514_v3 = vsub.f32 %v502_v55, %v512_v1 }
 0x331   :  { %v515_v4 = vmul.f32 %v513_v2, %v513_v2  ;;  %v516_v5 = vmul.f32 %v514_v3, %v514_v3 }
 0x333   :  { %v517_v6 = vadd.f32 %v516_v5, %v515_v4 }
 0x335   :  { %v518_v7 = vrot.slane %v517_v6, 4 }
 0x337   :  { %v519_v8 = vadd.f32 %v518_v7, %v517_v6 }
 0x339   :  { %v520_v9 = vrot.slane %v519_v8, 2 }
 0x33b   :  { %v521_v10 = vadd.f32 %v520_v9, %v519_v8 }
 0x33d   :  { %v522_v11 = vrot.slane %v521_v10, 1 }
 0x33f   :  { %v523_v12 = vadd.f32 %v522_v11, %v521_v10 }
 0x341   :  { %v524_v13 = vmul.f32 0.0625, %v523_v12 }
 0x343   :  { %v526_v14 = vadd.f32 1e-05, %v524_v13 }
 0x345   :  { %703 = vrsqrt.f32 %v526_v14 }
 0x352   :  { %v704_v16 = vpop.eup %703 }
 0x353   :  { %v528_v17 = vmul.f32 %v704_v16, %v525_v15 }
 0x355   :  { %v530_v19 = vmul.f32 %v528_v17, %v512_v1  ;;  %v536_v20 = vrot.slane %v528_v17, %v943_v47 }
 0x357   :  { %v531_v0 = vsub.f32 %v529_v18, %v530_v19  ;;  %v539_v21 = vmul.f32 %v536_v20, %v502_v55  ;;  %v538_v22 = vmul.f32 %v536_v20, %v499_v54 }
 0x359   :  { %v544_v23 = vrot.slane %v531_v0, %v943_v47 }
 0x35b   :  { %v546_v24 = vadd.f32 %v544_v23, %v538_v22  ;;  %v547_v25 = vadd.f32 %v544_v23, %v539_v21 }
 0x35d   :  { %548 = vst [vmem:[#allocation10] sm:$0xff] %v546_v24  ;;  %549 = vst [vmem:[#allocation10 + $0x8] sm:$0xff] %v547_v25 }
 0x35e   :  { %796 = shalt.err (!%p793_p10)
}
 0x35f   :  { %561 = dma.vmem_to_hbm [thread:$0]  %s556_s24, 256, %s998_s13, [#allocation4], %s817_s18, %s817_s18, %s818_s19  }
 0x360   :  { %811 = dma.done.wait [#allocation4], 256  }
 0x361   :  { %812 = vsyncadd [#allocation4], 4294967040 }
 0x362   :  { %565 = vsyncpa [#allocation3], 1 }
 0x363   :  { %566 = vsyncpa [#allocation6], 1 }
 0x364   :  { %567 = vsyncpa [#allocation9], 1 }
 0x365   :  { %568 = vsyncpa [#allocation4], 1 }

</bundles_post_ra>
